<compile_context>
chip_gen: v7x
topology: tpu7x:2x2x1
jax: 0.10.0
libtpu: 0.0.40
codegen_flags: <defaults>
</compile_context>

<pallas_src>
import jax
import jax.numpy as jnp
from jax.experimental import pallas as pl
from jax.experimental.pallas import tpu as pltpu


def _round_up(x, m):
    return (x + m - 1) // m * m


def _pick_tile(q, target):
    """Largest multiple-of-8 divisor of q that is <= target (or q itself)."""
    if q <= target:
        return q
    t = target - (target % 8)
    while t >= 8:
        if q % t == 0:
            return t
        t -= 8
    return q  # fallback: single tile


def _initial_block_kernel(x_ref, w_ref, shift_ref, o_ref):
    # x_ref:     (4, tq, Kp)   im2col LHS; leading axis = the 4 positions of each 2x2
    #                          pool window, rows ordered (n, ho, wo), K = 9*Cin (padded)
    # w_ref:     (Kp, Cout_p)  conv weights with BN scale folded in
    # shift_ref: (1, Cout_p)   fused BN shift (absorbs the conv bias)
    # o_ref:     (tq, Cout_p)  pooled, lane-dense output tile
    four, tq, kp = x_ref.shape
    cout_p = o_ref.shape[-1]

    # Single K-folded MXU matmul (f32 accumulation inside the MXU).
    xs = x_ref[...].reshape(four * tq, kp)
    y = jnp.dot(xs, w_ref[...], preferred_element_type=jnp.float32)
    y = y.reshape(four, tq, cout_p)

    # MaxPool2d(2,2): elementwise max of 4 contiguous tile-aligned slabs.
    p = jnp.maximum(jnp.maximum(y[0], y[1]), jnp.maximum(y[2], y[3]))

    # Fused BatchNorm(eval)+bias shift, ReLU, lane-dense store.
    p = jnp.maximum(p + shift_ref[...], 0.0)
    o_ref[...] = p.astype(o_ref.dtype)


def initial_block(x_nchw, conv_w, conv_b, gamma, beta,
                  running_mean, running_var, eps=1e-5,
                  compute_dtype=jnp.bfloat16, tile_rows=512):
    """Forward of InitialBlock. x_nchw: (N, Cin, H, W) -> (N, Cout, H//2, W//2).

    compute_dtype controls the matmul operand dtype (accumulation is always f32).
    Default bf16 is the native MXU mode on all TPU generations; use jnp.float32 for
    bit-closer agreement with the PyTorch module.
    """
    N, Cin, H, W = x_nchw.shape
    Cout = conv_w.shape[0]
    assert H % 2 == 0 and W % 2 == 0
    Hout, Wout = H // 2, W // 2
    Q = N * Hout * Wout                 # pooled output rows (matmul M / 4)
    K = 9 * Cin                         # folded contraction dim
    Kp = _round_up(K, 8)
    Cout_p = _round_up(Cout, 128)       # lane-dense output channels

    # Fold BN (eval) into the conv: w' = w * scale, shift = beta + (b - mean) * scale.
    scale = gamma / jnp.sqrt(running_var + eps)                      # (Cout,)
    shift = beta + (conv_b - running_mean) * scale                   # (Cout,)
    w_hwio = jnp.transpose(conv_w, (2, 3, 1, 0)) * scale[None, None, None, :]
    w_mat = w_hwio.reshape(K, Cout)                                  # (ky,kx,cin)-major
    w_mat = jnp.pad(w_mat, ((0, Kp - K), (0, Cout_p - Cout))).astype(compute_dtype)
    shift_p = jnp.pad(shift, (0, Cout_p - Cout)).reshape(1, Cout_p).astype(jnp.float32)

    # im2col with pool-major row ordering (py, px, n, ho, wo). The tap/channel order of
    # the last axis matches w_mat's row order.
    x_nhwc = jnp.transpose(x_nchw, (0, 2, 3, 1))
    x_pad = jnp.pad(x_nhwc, ((0, 0), (1, 1), (1, 1), (0, 0)))        # (N, H+2, W+2, Cin)
    taps = [x_pad[:, ky:ky + H, kx:kx + W, :] for ky in range(3) for kx in range(3)]
    patches = jnp.concatenate(taps, axis=-1)                         # (N, H, W, K)
    patches = patches.reshape(N, Hout, 2, Wout, 2, K)
    patches = jnp.transpose(patches, (2, 4, 0, 1, 3, 5))             # (2,2,N,Hout,Wout,K)
    lhs = patches.reshape(4, Q, K)
    lhs = jnp.pad(lhs, ((0, 0), (0, 0), (0, Kp - K))).astype(compute_dtype)

    tq = _pick_tile(Q, tile_rows)
    grid = (Q // tq,)

    out = pl.pallas_call(
        _initial_block_kernel,
        out_shape=jax.ShapeDtypeStruct((Q, Cout_p), x_nchw.dtype),
        grid=grid,
        in_specs=[
            pl.BlockSpec((4, tq, Kp), lambda i: (0, i, 0)),
            pl.BlockSpec((Kp, Cout_p), lambda i: (0, 0)),
            pl.BlockSpec((1, Cout_p), lambda i: (0, 0)),
        ],
        out_specs=pl.BlockSpec((tq, Cout_p), lambda i: (i, 0)),
        compiler_params=pltpu.CompilerParams(
            dimension_semantics=("parallel",),
            vmem_limit_bytes=32 * 1024 * 1024),
    )(lhs, w_mat, shift_p)

    # Drop padded channels, back to NCHW.
    out = out[:, :Cout].reshape(N, Hout, Wout, Cout)
    return jnp.transpose(out, (0, 3, 1, 2))


def reference_initial_block(x, conv_w, conv_b, gamma, beta,
                            running_mean, running_var, eps=1e-5):
    y = jax.lax.conv_general_dilated(
        x, conv_w, window_strides=(1, 1), padding="SAME",
        dimension_numbers=("NCHW", "OIHW", "NCHW"))
    y = y + conv_b[None, :, None, None]
    y = (y - running_mean[None, :, None, None]) / jnp.sqrt(
        running_var[None, :, None, None] + eps)
    y = y * gamma[None, :, None, None] + beta[None, :, None, None]
    y = jnp.maximum(y, 0.0)
    N, C, H, W = y.shape
    y = y.reshape(N, C, H // 2, 2, W // 2, 2).max(axis=(3, 5))
    return y


if __name__ == "__main__":
    N, Cin, Cout, H, W = 2, 4, 8, 16, 16

    key = jax.random.PRNGKey(0)
    k_x, k_w, k_b, k_g, k_be, k_m, k_v = jax.random.split(key, 7)

    x = jax.random.normal(k_x, (N, Cin, H, W), jnp.float32)
    conv_w = jax.random.normal(k_w, (Cout, Cin, 3, 3), jnp.float32) * 0.1
    conv_b = jax.random.normal(k_b, (Cout,), jnp.float32) * 0.1
    gamma = 1.0 + 0.1 * jax.random.normal(k_g, (Cout,), jnp.float32)
    beta = 0.1 * jax.random.normal(k_be, (Cout,), jnp.float32)
    running_mean = 0.1 * jax.random.normal(k_m, (Cout,), jnp.float32)
    running_var = 1.0 + 0.1 * jax.random.uniform(k_v, (Cout,), jnp.float32)

    ref = reference_initial_block(x, conv_w, conv_b, gamma, beta,
                                  running_mean, running_var)

    # f32 compute path: should match the XLA reference tightly.
    out_f32 = initial_block(x, conv_w, conv_b, gamma, beta, running_mean,
                            running_var, compute_dtype=jnp.float32)
    out_f32 = jax.block_until_ready(out_f32)
    assert out_f32.shape == (N, Cout, H // 2, W // 2), out_f32.shape
    assert jnp.allclose(out_f32, ref, atol=1e-4, rtol=1e-4), \
        float(jnp.max(jnp.abs(out_f32 - ref)))

    # Default bf16 compute path: loose tolerance for bf16 operand rounding.
    out_bf16 = initial_block(x, conv_w, conv_b, gamma, beta, running_mean,
                             running_var)
    out_bf16 = jax.block_until_ready(out_bf16)
    assert out_bf16.shape == (N, Cout, H // 2, W // 2), out_bf16.shape
    assert jnp.allclose(out_bf16, ref, atol=1e-1, rtol=1e-1), \
        float(jnp.max(jnp.abs(out_bf16 - ref)))

    print("KERNEL_OK")
</pallas_src>

<mosaic_0001>
module attributes {stable_mosaic.version = 11 : i64} {
  func.func @_initial_block_kernel(%arg0: i32, %arg1: memref<4x128x40xf32, #tpu.memory_space<vmem>>, %arg2: memref<40x128xf32, #tpu.memory_space<vmem>>, %arg3: memref<1x128xf32, #tpu.memory_space<vmem>>, %arg4: memref<128x128xf32, #tpu.memory_space<vmem>>) attributes {dimension_semantics = [#tpu.dimension_semantics<parallel>], iteration_bounds = array<i64: 1>, scalar_prefetch = 0 : i64, scratch_operands = 0 : i64, tpu.core_type = #tpu.core_type<tc>, window_params = [{transform_indices = @transform_0, window_bounds = array<i64: 4, 128, 40>}, {pipeline_mode = #tpu.pipeline_mode<synchronous>, transform_indices = @transform_1, window_bounds = array<i64: 40, 128>}, {pipeline_mode = #tpu.pipeline_mode<synchronous>, transform_indices = @transform_2, window_bounds = array<i64: 1, 128>}, {transform_indices = @transform_3, window_bounds = array<i64: 128, 128>}]} {
    %c0 = arith.constant 0 : index
    %c0_0 = arith.constant 0 : index
    %c0_1 = arith.constant 0 : index
    %0 = vector.load %arg1[%c0, %c0_0, %c0_1] : memref<4x128x40xf32, #tpu.memory_space<vmem>>, vector<4x128x40xf32>
    %1 = vector.shape_cast %0 : vector<4x128x40xf32> to vector<512x40xf32>
    %c0_2 = arith.constant 0 : index
    %c0_3 = arith.constant 0 : index
    %2 = vector.load %arg2[%c0_2, %c0_3] : memref<40x128xf32, #tpu.memory_space<vmem>>, vector<40x128xf32>
    %cst = arith.constant dense<0.000000e+00> : vector<512x128xf32>
    %3 = tpu.matmul %1, %2, %cst {dimension_numbers = #tpu.dot_dimension_numbers<[1], [0], [0], [1], [0, 0, 1, 1], [], []>} : vector<512x40xf32>, vector<40x128xf32>, vector<512x128xf32> -> vector<512x128xf32>
    %4 = vector.shape_cast %3 : vector<512x128xf32> to vector<4x128x128xf32>
    %5 = vector.extract_strided_slice %4 {offsets = [0, 0, 0], sizes = [1, 128, 128], strides = [1, 1, 1]} : vector<4x128x128xf32> to vector<1x128x128xf32>
    %6 = vector.shape_cast %5 : vector<1x128x128xf32> to vector<128x128xf32>
    %7 = vector.extract_strided_slice %4 {offsets = [1, 0, 0], sizes = [1, 128, 128], strides = [1, 1, 1]} : vector<4x128x128xf32> to vector<1x128x128xf32>
    %8 = vector.shape_cast %7 : vector<1x128x128xf32> to vector<128x128xf32>
    %9 = arith.maximumf %6, %8 : vector<128x128xf32>
    %10 = vector.extract_strided_slice %4 {offsets = [2, 0, 0], sizes = [1, 128, 128], strides = [1, 1, 1]} : vector<4x128x128xf32> to vector<1x128x128xf32>
    %11 = vector.shape_cast %10 : vector<1x128x128xf32> to vector<128x128xf32>
    %12 = vector.extract_strided_slice %4 {offsets = [3, 0, 0], sizes = [1, 128, 128], strides = [1, 1, 1]} : vector<4x128x128xf32> to vector<1x128x128xf32>
    %13 = vector.shape_cast %12 : vector<1x128x128xf32> to vector<128x128xf32>
    %14 = arith.maximumf %11, %13 : vector<128x128xf32>
    %15 = arith.maximumf %9, %14 : vector<128x128xf32>
    %c0_4 = arith.constant 0 : index
    %c0_5 = arith.constant 0 : index
    %16 = vector.load %arg3[%c0_4, %c0_5] : memref<1x128xf32, #tpu.memory_space<vmem>>, vector<1x128xf32>
    %17 = vector.broadcast %16 : vector<1x128xf32> to vector<128x128xf32>
    %18 = arith.addf %15, %17 : vector<128x128xf32>
    %cst_6 = arith.constant 0.000000e+00 : f32
    %19 = vector.broadcast %cst_6 : f32 to vector<128x128xf32>
    %20 = arith.maximumf %18, %19 : vector<128x128xf32>
    %c0_7 = arith.constant 0 : index
    %c0_8 = arith.constant 0 : index
    %21 = vector.load %arg4[%c0_7, %c0_8] : memref<128x128xf32, #tpu.memory_space<vmem>>, vector<128x128xf32>
    tpu.vector_store %arg4[%c0_7, %c0_8], %20 {strides = array<i32>} : memref<128x128xf32, #tpu.memory_space<vmem>>, vector<128x128xf32>,
    return
  }
  func.func @transform_0(%arg0: i32) -> (i32, i32, i32) {
    %c0_i32 = arith.constant 0 : i32
    %c0_i32_0 = arith.constant 0 : i32
    %c0_i32_1 = arith.constant 0 : i32
    return %c0_i32, %arg0, %c0_i32_0 : i32, i32, i32
  }
  func.func @transform_1(%arg0: i32) -> (i32, i32) {
    %c0_i32 = arith.constant 0 : i32
    %c0_i32_0 = arith.constant 0 : i32
    %c0_i32_1 = arith.constant 0 : i32
    return %c0_i32, %c0_i32_0 : i32, i32
  }
  func.func @transform_2(%arg0: i32) -> (i32, i32) {
    %c0_i32 = arith.constant 0 : i32
    %c0_i32_0 = arith.constant 0 : i32
    %c0_i32_1 = arith.constant 0 : i32
    return %c0_i32, %c0_i32_0 : i32, i32
  }
  func.func @transform_3(%arg0: i32) -> (i32, i32) {
    %c0_i32 = arith.constant 0 : i32
    %c0_i32_0 = arith.constant 0 : i32
    return %arg0, %c0_i32 : i32, i32
  }
}

</mosaic_0001>

<bundles_post_ra>
// kernel: tpu_custom_call.1
= control target key start
LH: loop header
LB: loop body
LE: loop exit
PB: predicated region body
PF: predicated region fallthrough
CT: control target
= control target key end

     0   :  { %vm84_vm0 = vcmask 326656   ;;  %s1455_s0 = inlined_call_operand.vmem [shape: f32[4,128,40], index: 0, kind: input, shape index: {}]   ;;  %s1456_s1 = inlined_call_operand.vmem [shape: f32[40,128], index: 1, kind: input, shape index: {}]   ;;  %s1457_s2 = inlined_call_operand.vmem [shape: f32[1,128], index: 2, kind: input, shape index: {}]   ;;  %s1458_s3 = inlined_call_operand.hbm [shape: f32[128,128], index: 3, kind: output, shape index: {}]  }
   0x1   :  { %v79_v0 = vld [vmem:[%s1456_s1] sm:$0xff]  ;;  %v80_v1 = vld [vmem:[%s1456_s1 + $0x8] sm:$0xff]  ;;  %v81_v2 = vld [vmem:[%s1456_s1 + $0x10] sm:$0xff] }
   0x2   :  { %v1021_v3 = vpack.c.bf16 %v80_v1, %v79_v0  ;;  %v82_v4 = vld [vmem:[%s1456_s1 + $0x18] sm:$0xff]  ;;  %v15_v5 = vld [vmem:[%s1455_s0] sm:$0xff]  ;;  %v16_v9 = vld [vmem:[%s1455_s0 + $0x8] sm:$0xff] }
   0x3   :  { %v1025_v6 = vpack.c.bf16 %v82_v4, %v81_v2  ;;  %925 = vmatprep.mubr.msk.f32.mxu0 %vm84_vm0, %v15_v5  ;;  %v47_v7 = vld [vmem:[%s1455_s0 + $0x100] sm:$0xff]  ;;  %v48_v10 = vld [vmem:[%s1455_s0 + $0x108] sm:$0xff]  ;;  %v17_v11 = vld [vmem:[%s1455_s0 + $0x10] sm:$0xff] }
   0x4   :  { %1022 = vmatprep.subr.bf16.mxu0 %v1021_v3  ;;  %1029 = vmatprep.subr.bf16.mxu1 %v1021_v3  ;;  %v83_v8 = vld [vmem:[%s1456_s1 + $0x20] sm:$0xff]  ;;  %v49_v12 = vld [vmem:[%s1455_s0 + $0x110] sm:$0xff]  ;;  %v18_v13 = vld [vmem:[%s1455_s0 + $0x18] sm:$0xff] }
   0x5   :  { %1024 = vmatpush3.bf16.msra.mxu0 %v1021_v3  ;;  %1032 = vmatpush3.bf16.msra.mxu1 %v1021_v3  ;;  %v50_v14 = vld [vmem:[%s1455_s0 + $0x118] sm:$0xff]  ;;  %v19_v15 = vld [vmem:[%s1455_s0 + $0x20] sm:$0xff]  ;;  %v20_v17 = vld [vmem:[%s1455_s0 + $0x28] sm:$0xff] }
   0x6   :  { %1026 = vmatprep.subr.bf16.mxu0 %v1025_v6  ;;  %1030 = vmatprep.subr.bf16.mxu1 %v1025_v6  ;;  %v51_v16 = vld [vmem:[%s1455_s0 + $0x120] sm:$0xff]  ;;  %v52_v18 = vld [vmem:[%s1455_s0 + $0x128] sm:$0xff]  ;;  %v21_v19 = vld [vmem:[%s1455_s0 + $0x30] sm:$0xff] }
   0x7   :  { %973 = vmatprep.mubr.msk.f32.mxu1 %vm84_vm0, %v47_v7  ;;  %v53_v20 = vld [vmem:[%s1455_s0 + $0x130] sm:$0xff]  ;;  %v22_v21 = vld [vmem:[%s1455_s0 + $0x38] sm:$0xff]  ;;  %v23_v23 = vld [vmem:[%s1455_s0 + $0x40] sm:$0xff] }
   0x8   :  { %v54_v22 = vld [vmem:[%s1455_s0 + $0x138] sm:$0xff]  ;;  %v55_v24 = vld [vmem:[%s1455_s0 + $0x140] sm:$0xff] }
   0x9   :  { %1028 = vmatpush3.bf16.msra.mxu0 %v1025_v6  ;;  %1033 = vmatpush3.bf16.msra.mxu1 %v1025_v6 }
   0xa   :  { %923 = vmatprep.subr.mxu0 %v83_v8  ;;  %1031 = vmatprep.subr.mxu1 %v83_v8 }
   0xd   :  { %924 = vmatpush3.msra.mxu0 %v83_v8  ;;  %1034 = vmatpush3.msra.mxu1 %v83_v8 }
   0xe   :  { %926 = vmatmul.mubr.msk.f32.vlgmr.msra.gmra.mrb[0].mxu0 %vm84_vm0, %v16_v9  ;;  %974 = vmatmul.mubr.msk.f32.vlgmr.msra.gmra.mrb[0].mxu1 %vm84_vm0, %v48_v10 }
   0xf   :  { %928 = vmatprep.mubr.msk.f32.mxu0 %vm84_vm0, %v17_v11  ;;  %976 = vmatprep.mubr.msk.f32.mxu1 %vm84_vm0, %v49_v12 }
  0x12   :  { %929 = vmatmul.mubr.msk.f32.gmra.mrb[2].mxu0 %vm84_vm0, %v18_v13  ;;  %977 = vmatmul.mubr.msk.f32.gmra.mrb[2].mxu1 %vm84_vm0, %v50_v14 }
  0x13   :  { %931 = vmatprep.mubr.msk.f32.mxu0 %vm84_vm0, %v19_v15  ;;  %979 = vmatprep.mubr.msk.f32.mxu1 %vm84_vm0, %v51_v16 }
  0x16   :  { %932 = vmatmul.mubr.msk.f32.gmra.mrb[4].mxu0 %vm84_vm0, %v20_v17  ;;  %980 = vmatmul.mubr.msk.f32.gmra.mrb[4].mxu1 %vm84_vm0, %v52_v18 }
  0x17   :  { %934 = vmatprep.mubr.msk.f32.mxu0 %vm84_vm0, %v21_v19  ;;  %982 = vmatprep.mubr.msk.f32.mxu1 %vm84_vm0, %v53_v20 }
  0x18   :  { %8 = vsyncpa [#allocation3], 0  ;;  %v24_v25 = vld [vmem:[%s1455_s0 + $0x48] sm:$0xff]  ;;  %v25_v27 = vld [vmem:[%s1455_s0 + $0x50] sm:$0xff] }
  0x19   :  { %v56_v26 = vld [vmem:[%s1455_s0 + $0x148] sm:$0xff]  ;;  %v57_v28 = vld [vmem:[%s1455_s0 + $0x150] sm:$0xff]  ;;  %v26_v29 = vld [vmem:[%s1455_s0 + $0x58] sm:$0xff] }
  0x1a   :  { %935 = vmatmul.mubr.msk.f32.gmra.mrb[6].mxu0 %vm84_vm0, %v22_v21  ;;  %983 = vmatmul.mubr.msk.f32.gmra.mrb[6].mxu1 %vm84_vm0, %v54_v22  ;;  %v58_v30 = vld [vmem:[%s1455_s0 + $0x158] sm:$0xff]  ;;  %v27_v31 = vld [vmem:[%s1455_s0 + $0x60] sm:$0xff]  ;;  %v28_v33 = vld [vmem:[%s1455_s0 + $0x68] sm:$0xff] }
  0x1b   :  { %937 = vmatprep.mubr.msk.f32.mxu0 %vm84_vm0, %v23_v23  ;;  %985 = vmatprep.mubr.msk.f32.mxu1 %vm84_vm0, %v55_v24  ;;  %v59_v32 = vld [vmem:[%s1455_s0 + $0x160] sm:$0xff]  ;;  %v60_v34 = vld [vmem:[%s1455_s0 + $0x168] sm:$0xff]  ;;  %v29_v35 = vld [vmem:[%s1455_s0 + $0x70] sm:$0xff] }
  0x1c   :  { %v61_v36 = vld [vmem:[%s1455_s0 + $0x170] sm:$0xff]  ;;  %v30_v37 = vld [vmem:[%s1455_s0 + $0x78] sm:$0xff]  ;;  %v31_v39 = vld [vmem:[%s1455_s0 + $0x80] sm:$0xff] }
  0x1d   :  { %v62_v38 = vld [vmem:[%s1455_s0 + $0x178] sm:$0xff]  ;;  %v63_v40 = vld [vmem:[%s1455_s0 + $0x180] sm:$0xff]  ;;  %v32_v41 = vld [vmem:[%s1455_s0 + $0x88] sm:$0xff] }
  0x1e   :  { %938 = vmatmul.mubr.msk.f32.gmra.mrb[8].mxu0 %vm84_vm0, %v24_v25  ;;  %986 = vmatmul.mubr.msk.f32.gmra.mrb[8].mxu1 %vm84_vm0, %v56_v26  ;;  %v64_v42 = vld [vmem:[%s1455_s0 + $0x188] sm:$0xff]  ;;  %v33_v43 = vld [vmem:[%s1455_s0 + $0x90] sm:$0xff]  ;;  %v34_v45 = vld [vmem:[%s1455_s0 + $0x98] sm:$0xff] }
  0x1f   :  { %940 = vmatprep.mubr.msk.f32.mxu0 %vm84_vm0, %v25_v27  ;;  %988 = vmatprep.mubr.msk.f32.mxu1 %vm84_vm0, %v57_v28  ;;  %v65_v44 = vld [vmem:[%s1455_s0 + $0x190] sm:$0xff]  ;;  %v66_v46 = vld [vmem:[%s1455_s0 + $0x198] sm:$0xff]  ;;  %v35_v47 = vld [vmem:[%s1455_s0 + $0xa0] sm:$0xff] }
  0x20   :  { %v67_v48 = vld [vmem:[%s1455_s0 + $0x1a0] sm:$0xff]  ;;  %v36_v49 = vld [vmem:[%s1455_s0 + $0xa8] sm:$0xff]  ;;  %v37_v51 = vld [vmem:[%s1455_s0 + $0xb0] sm:$0xff] }
  0x21   :  { %v68_v50 = vld [vmem:[%s1455_s0 + $0x1a8] sm:$0xff]  ;;  %v69_v52 = vld [vmem:[%s1455_s0 + $0x1b0] sm:$0xff]  ;;  %v38_v53 = vld [vmem:[%s1455_s0 + $0xb8] sm:$0xff] }
  0x22   :  { %941 = vmatmul.mubr.msk.f32.gmra.mrb[10].mxu0 %vm84_vm0, %v26_v29  ;;  %989 = vmatmul.mubr.msk.f32.gmra.mrb[10].mxu1 %vm84_vm0, %v58_v30  ;;  %v70_v54 = vld [vmem:[%s1455_s0 + $0x1b8] sm:$0xff]  ;;  %v39_v55 = vld [vmem:[%s1455_s0 + $0xc0] sm:$0xff]  ;;  %v40_v57 = vld [vmem:[%s1455_s0 + $0xc8] sm:$0xff] }
  0x23   :  { %943 = vmatprep.mubr.msk.f32.mxu0 %vm84_vm0, %v27_v31  ;;  %991 = vmatprep.mubr.msk.f32.mxu1 %vm84_vm0, %v59_v32  ;;  %v71_v56 = vld [vmem:[%s1455_s0 + $0x1c0] sm:$0xff]  ;;  %v72_v58 = vld [vmem:[%s1455_s0 + $0x1c8] sm:$0xff]  ;;  %v41_v59 = vld [vmem:[%s1455_s0 + $0xd0] sm:$0xff] }
  0x24   :  { %v73_v60 = vld [vmem:[%s1455_s0 + $0x1d0] sm:$0xff]  ;;  %v42_v61 = vld [vmem:[%s1455_s0 + $0xd8] sm:$0xff]  ;;  %v43_v63 = vld [vmem:[%s1455_s0 + $0xe0] sm:$0xff] }
  0x25   :  { %v74_v62 = vld [vmem:[%s1455_s0 + $0x1d8] sm:$0xff]  ;;  %v75_v0 = vld [vmem:[%s1455_s0 + $0x1e0] sm:$0xff]  ;;  %v44_v1 = vld [vmem:[%s1455_s0 + $0xe8] sm:$0xff] }
  0x26   :  { %944 = vmatmul.mubr.msk.f32.gmra.mrb[12].mxu0 %vm84_vm0, %v28_v33  ;;  %992 = vmatmul.mubr.msk.f32.gmra.mrb[12].mxu1 %vm84_vm0, %v60_v34  ;;  %v76_v2 = vld [vmem:[%s1455_s0 + $0x1e8] sm:$0xff]  ;;  %v45_v3 = vld [vmem:[%s1455_s0 + $0xf0] sm:$0xff]  ;;  %v46_v5 = vld [vmem:[%s1455_s0 + $0xf8] sm:$0xff] }
  0x27   :  { %946 = vmatprep.mubr.msk.f32.mxu0 %vm84_vm0, %v29_v35  ;;  %994 = vmatprep.mubr.msk.f32.mxu1 %vm84_vm0, %v61_v36  ;;  %v77_v4 = vld [vmem:[%s1455_s0 + $0x1f0] sm:$0xff]  ;;  %v78_v6 = vld [vmem:[%s1455_s0 + $0x1f8] sm:$0xff] }
  0x2a   :  { %947 = vmatmul.mubr.msk.f32.gmra.mrb[14].mxu0 %vm84_vm0, %v30_v37  ;;  %995 = vmatmul.mubr.msk.f32.gmra.mrb[14].mxu1 %vm84_vm0, %v62_v38 }
  0x2b   :  { %949 = vmatprep.mubr.msk.f32.mxu0 %vm84_vm0, %v31_v39  ;;  %997 = vmatprep.mubr.msk.f32.mxu1 %vm84_vm0, %v63_v40 }
  0x2e   :  { %950 = vmatmul.mubr.msk.f32.gmra.mrb[16].mxu0 %vm84_vm0, %v32_v41  ;;  %998 = vmatmul.mubr.msk.f32.gmra.mrb[16].mxu1 %vm84_vm0, %v64_v42 }
  0x2f   :  { %952 = vmatprep.mubr.msk.f32.mxu0 %vm84_vm0, %v33_v43  ;;  %1000 = vmatprep.mubr.msk.f32.mxu1 %vm84_vm0, %v65_v44 }
  0x32   :  { %953 = vmatmul.mubr.msk.f32.gmra.mrb[18].mxu0 %vm84_vm0, %v34_v45  ;;  %1001 = vmatmul.mubr.msk.f32.gmra.mrb[18].mxu1 %vm84_vm0, %v66_v46  ;;  %v1403_v45 = vld [vmem:[%s1457_s2] ss:$0 sm:$0xff]  ;;  %s1062_s2 = smov [#allocation2]  }
  0x33   :  { %955 = vmatprep.mubr.msk.f32.mxu0 %vm84_vm0, %v35_v47  ;;  %1003 = vmatprep.mubr.msk.f32.mxu1 %vm84_vm0, %v67_v48  ;;  %s770_s11 = sshll.u32 %s1062_s2, 4  ;;  %s771_s11 = int_to_ptr.vmem [resolvable:$true] %s770_s11 }
  0x34   :  { %s1038_s12 = scalar_lea.vmem %s771_s11, 2048  ;;  %p1043_p1 = scmp.lt.s32.totalorder %s771_s11, %s771_s11 }
  0x35   :  { %p1039_p0 = scmp.ne.s32.totalorder %s771_s11, %s1038_s12  ;;  %p1044_p2 = scmp.lt.s32.totalorder %s1038_s12, %s1038_s12 }
  0x36   :  { %956 = vmatmul.mubr.msk.f32.gmra.mrb[20].mxu0 %vm84_vm0, %v36_v49  ;;  %1004 = vmatmul.mubr.msk.f32.gmra.mrb[20].mxu1 %vm84_vm0, %v68_v50 }
  0x37   :  { %958 = vmatprep.mubr.msk.f32.mxu0 %vm84_vm0, %v37_v51  ;;  %1006 = vmatprep.mubr.msk.f32.mxu1 %vm84_vm0, %v69_v52  ;;  %p1045_p3 = por %p1044_p2, %p1043_p1 }
  0x39   :  { %p1046_p4 = pnand %p1045_p3, %p1039_p0 }
  0x3a   :  { %959 = vmatmul.mubr.msk.f32.gmra.mrb[22].mxu0 %vm84_vm0, %v38_v53  ;;  %1007 = vmatmul.mubr.msk.f32.gmra.mrb[22].mxu1 %vm84_vm0, %v70_v54 }
  0x3b   :  { %961 = vmatprep.mubr.msk.f32.mxu0 %vm84_vm0, %v39_v55  ;;  %1009 = vmatprep.mubr.msk.f32.mxu1 %vm84_vm0, %v71_v56 }
  0x3e   :  { %962 = vmatmul.mubr.msk.f32.gmra.mrb[24].mxu0 %vm84_vm0, %v40_v57  ;;  %1010 = vmatmul.mubr.msk.f32.gmra.mrb[24].mxu1 %vm84_vm0, %v72_v58 }
  0x3f   :  { %964 = vmatprep.mubr.msk.f32.mxu0 %vm84_vm0, %v41_v59  ;;  %1012 = vmatprep.mubr.msk.f32.mxu1 %vm84_vm0, %v73_v60 }
  0x42   :  { %965 = vmatmul.mubr.msk.f32.gmra.mrb[26].mxu0 %vm84_vm0, %v42_v61  ;;  %1013 = vmatmul.mubr.msk.f32.gmra.mrb[26].mxu1 %vm84_vm0, %v74_v62 }
  0x43   :  { %967 = vmatprep.mubr.msk.f32.mxu0 %vm84_vm0, %v43_v63  ;;  %1015 = vmatprep.mubr.msk.f32.mxu1 %vm84_vm0, %v75_v0 }
  0x46   :  { %968 = vmatmul.mubr.msk.f32.gmra.mrb[28].mxu0 %vm84_vm0, %v44_v1  ;;  %1016 = vmatmul.mubr.msk.f32.gmra.mrb[28].mxu1 %vm84_vm0, %v76_v2 }
  0x47   :  { %970 = vmatprep.mubr.msk.f32.mxu0 %vm84_vm0, %v45_v3  ;;  %1018 = vmatprep.mubr.msk.f32.mxu1 %vm84_vm0, %v77_v4 }
  0x4a   :  { %971 = vmatmul.mubr.msk.f32.gmra.mrb[30].mxu0 %vm84_vm0, %v46_v5  ;;  %1019 = vmatmul.mubr.msk.f32.gmra.mrb[30].mxu1 %vm84_vm0, %v78_v6 }
  0xe1   :  { %v927_v7 = vpop.f32.mrb[0].mxu0  ;;  %v975_v8 = vpop.f32.mrb[0].mxu1 }
  0xe2   :  { %v343_v9 = vpop.f32.mrb[1].mxu0  ;;  %v503_v10 = vpop.f32.mrb[1].mxu1 }
  0xe5   :  { %v930_v11 = vpop.f32.mrb[2].mxu0  ;;  %v978_v12 = vpop.f32.mrb[2].mxu1 }
  0xe6   :  { %v353_v13 = vpop.f32.mrb[3].mxu0  ;;  %v513_v14 = vpop.f32.mrb[3].mxu1 }
  0xe9   :  { %v1356_v15 = vpop.f32.mrb[4].mxu0  ;;  %v981_v16 = vpop.f32.mrb[4].mxu1 }
  0xea   :  { %v1358_v17 = vpop.f32.mrb[5].mxu0  ;;  %v523_v18 = vpop.f32.mrb[5].mxu1 }
  0xed   :  { %v1360_v19 = vpop.f32.mrb[6].mxu0  ;;  %v1362_v20 = vpop.f32.mrb[6].mxu1 }
  0xee   :  { %v1364_v21 = vpop.f32.mrb[7].mxu0  ;;  %v1366_v22 = vpop.f32.mrb[7].mxu1 }
  0xf1   :  { %v1368_v23 = vpop.f32.mrb[8].mxu0  ;;  %v1370_v24 = vpop.f32.mrb[8].mxu1 }
  0xf2   :  { %v1372_v25 = vpop.f32.mrb[9].mxu0  ;;  %v1374_v26 = vpop.f32.mrb[9].mxu1 }
  0xf5   :  { %v1376_v27 = vpop.f32.mrb[10].mxu0  ;;  %v1378_v28 = vpop.f32.mrb[10].mxu1 }
  0xf6   :  { %v1380_v29 = vpop.f32.mrb[11].mxu0  ;;  %v1382_v30 = vpop.f32.mrb[11].mxu1 }
  0xf9   :  { %v1384_v31 = vpop.f32.mrb[12].mxu0  ;;  %v1386_v32 = vpop.f32.mrb[12].mxu1 }
  0xfa   :  { %v1388_v33 = vpop.f32.mrb[13].mxu0  ;;  %v1390_v34 = vpop.f32.mrb[13].mxu1 }
  0xfd   :  { %v1392_v35 = vpop.f32.mrb[14].mxu0  ;;  %v1394_v36 = vpop.f32.mrb[14].mxu1 }
  0xfe   :  { %v1396_v37 = vpop.f32.mrb[15].mxu0  ;;  %v1398_v38 = vpop.f32.mrb[15].mxu1 }
 0x101   :  { %v951_v39 = vpop.f32.mrb[16].mxu0  ;;  %v999_v40 = vpop.f32.mrb[16].mxu1 }
 0x102   :  { %v663_v41 = vmax.f32 %v927_v7, %v951_v39  ;;  %v679_v42 = vmax.f32 %v975_v8, %v999_v40  ;;  %v423_v43 = vpop.f32.mrb[17].mxu0  ;;  %v583_v44 = vpop.f32.mrb[17].mxu1 }
 0x103   :  { %v662_v46 = vmax.f32 %v343_v9, %v423_v43  ;;  %v678_v47 = vmax.f32 %v503_v10, %v583_v44 }
 0x104   :  { %v695_v48 = vmax.f32 %v663_v41, %v679_v42 }
 0x105   :  { %v694_v49 = vmax.f32 %v662_v46, %v678_v47  ;;  %v954_v50 = vpop.f32.mrb[18].mxu0  ;;  %v1002_v51 = vpop.f32.mrb[18].mxu1 }
 0x106   :  { %v718_v52 = vadd.f32 %v1403_v45, %v695_v48  ;;  %v665_v53 = vmax.f32 %v930_v11, %v954_v50  ;;  %v681_v54 = vmax.f32 %v978_v12, %v1002_v51  ;;  %v433_v55 = vpop.f32.mrb[19].mxu0  ;;  %v593_v56 = vpop.f32.mrb[19].mxu1 }
 0x107   :  { %v717_v57 = vadd.f32 %v1403_v45, %v694_v49  ;;  %v664_v58 = vmax.f32 %v353_v13, %v433_v55  ;;  %v680_v59 = vmax.f32 %v513_v14, %v593_v56 }
 0x108   :  { %v734_v60 = vmax.f32 %v718_v52, 0.0  ;;  %v697_v61 = vmax.f32 %v665_v53, %v681_v54 }
 0x109   :  { %v733_v62 = vmax.f32 %v717_v57, 0.0  ;;  %v696_v63 = vmax.f32 %v664_v58, %v680_v59  ;;  %v957_v0 = vpop.f32.mrb[20].mxu0  ;;  %v1005_v1 = vpop.f32.mrb[20].mxu1 }
 0x10a   :  { %750 = vst [vmem:[#allocation2 + $0x8] sm:$0xff] %v734_v60  ;;  %v720_v2 = vadd.f32 %v1403_v45, %v697_v61  ;;  %v667_v3 = vmax.f32 %v1356_v15, %v957_v0  ;;  %v683_v4 = vmax.f32 %v981_v16, %v1005_v1  ;;  %v443_v5 = vpop.f32.mrb[21].mxu0  ;;  %v603_v6 = vpop.f32.mrb[21].mxu1 }
 0x10b   :  { %749 = vst [vmem:[#allocation2] sm:$0xff] %v733_v62  ;;  %v719_v7 = vadd.f32 %v1403_v45, %v696_v63  ;;  %v666_v8 = vmax.f32 %v1358_v17, %v443_v5  ;;  %v682_v9 = vmax.f32 %v523_v18, %v603_v6 }
 0x10c   :  { %v736_v10 = vmax.f32 %v720_v2, 0.0  ;;  %v699_v11 = vmax.f32 %v667_v3, %v683_v4 }
 0x10d   :  { %v735_v12 = vmax.f32 %v719_v7, 0.0  ;;  %v698_v13 = vmax.f32 %v666_v8, %v682_v9  ;;  %v960_v14 = vpop.f32.mrb[22].mxu0  ;;  %v1008_v39 = vpop.f32.mrb[22].mxu1 }
 0x10e   :  { %752 = vst [vmem:[#allocation2 + $0x18] sm:$0xff] %v736_v10  ;;  %v722_v40 = vadd.f32 %v1403_v45, %v699_v11  ;;  %v669_v15 = vmax.f32 %v1360_v19, %v960_v14  ;;  %v685_v16 = vmax.f32 %v1362_v20, %v1008_v39  ;;  %v453_v41 = vpop.f32.mrb[23].mxu0  ;;  %v613_v42 = vpop.f32.mrb[23].mxu1 }
 0x10f   :  { %751 = vst [vmem:[#allocation2 + $0x10] sm:$0xff] %v735_v12  ;;  %v721_v43 = vadd.f32 %v1403_v45, %v698_v13  ;;  %v668_v17 = vmax.f32 %v1364_v21, %v453_v41  ;;  %v684_v18 = vmax.f32 %v1366_v22, %v613_v42 }
 0x110   :  { %v738_v44 = vmax.f32 %v722_v40, 0.0  ;;  %v701_v46 = vmax.f32 %v669_v15, %v685_v16 }
 0x111   :  { %v737_v47 = vmax.f32 %v721_v43, 0.0  ;;  %v700_v48 = vmax.f32 %v668_v17, %v684_v18  ;;  %v963_v49 = vpop.f32.mrb[24].mxu0  ;;  %v1011_v50 = vpop.f32.mrb[24].mxu1 }
 0x112   :  { %754 = vst [vmem:[#allocation2 + $0x28] sm:$0xff] %v738_v44  ;;  %v724_v19 = vadd.f32 %v1403_v45, %v701_v46  ;;  %v671_v20 = vmax.f32 %v1368_v23, %v963_v49  ;;  %v687_v51 = vmax.f32 %v1370_v24, %v1011_v50  ;;  %v463_v52 = vpop.f32.mrb[25].mxu0  ;;  %v623_v53 = vpop.f32.mrb[25].mxu1 }
 0x113   :  { %753 = vst [vmem:[#allocation2 + $0x20] sm:$0xff] %v737_v47  ;;  %v723_v21 = vadd.f32 %v1403_v45, %v700_v48  ;;  %v670_v22 = vmax.f32 %v1372_v25, %v463_v52  ;;  %v686_v54 = vmax.f32 %v1374_v26, %v623_v53 }
 0x114   :  { %v740_v55 = vmax.f32 %v724_v19, 0.0  ;;  %v703_v56 = vmax.f32 %v671_v20, %v687_v51 }
 0x115   :  { %v739_v57 = vmax.f32 %v723_v21, 0.0  ;;  %v702_v58 = vmax.f32 %v670_v22, %v686_v54  ;;  %v966_v59 = vpop.f32.mrb[26].mxu0  ;;  %v1014_v60 = vpop.f32.mrb[26].mxu1 }
 0x116   :  { %756 = vst [vmem:[#allocation2 + $0x38] sm:$0xff] %v740_v55  ;;  %v726_v23 = vadd.f32 %v1403_v45, %v703_v56  ;;  %v673_v24 = vmax.f32 %v1376_v27, %v966_v59  ;;  %v689_v61 = vmax.f32 %v1378_v28, %v1014_v60  ;;  %v473_v62 = vpop.f32.mrb[27].mxu0  ;;  %v633_v63 = vpop.f32.mrb[27].mxu1 }
 0x117   :  { %755 = vst [vmem:[#allocation2 + $0x30] sm:$0xff] %v739_v57  ;;  %v725_v25 = vadd.f32 %v1403_v45, %v702_v58  ;;  %v672_v26 = vmax.f32 %v1380_v29, %v473_v62  ;;  %v688_v0 = vmax.f32 %v1382_v30, %v633_v63 }
 0x118   :  { %v742_v1 = vmax.f32 %v726_v23, 0.0  ;;  %v705_v2 = vmax.f32 %v673_v24, %v689_v61 }
 0x119   :  { %v741_v3 = vmax.f32 %v725_v25, 0.0  ;;  %v704_v4 = vmax.f32 %v672_v26, %v688_v0  ;;  %v969_v5 = vpop.f32.mrb[28].mxu0  ;;  %v1017_v6 = vpop.f32.mrb[28].mxu1 }
 0x11a   :  { %758 = vst [vmem:[#allocation2 + $0x48] sm:$0xff] %v742_v1  ;;  %v728_v27 = vadd.f32 %v1403_v45, %v705_v2  ;;  %v675_v28 = vmax.f32 %v1384_v31, %v969_v5  ;;  %v691_v7 = vmax.f32 %v1386_v32, %v1017_v6  ;;  %v483_v8 = vpop.f32.mrb[29].mxu0  ;;  %v643_v9 = vpop.f32.mrb[29].mxu1 }
 0x11b   :  { %757 = vst [vmem:[#allocation2 + $0x40] sm:$0xff] %v741_v3  ;;  %v727_v29 = vadd.f32 %v1403_v45, %v704_v4  ;;  %v674_v30 = vmax.f32 %v1388_v33, %v483_v8  ;;  %v690_v10 = vmax.f32 %v1390_v34, %v643_v9 }
 0x11c   :  { %v744_v11 = vmax.f32 %v728_v27, 0.0  ;;  %v707_v12 = vmax.f32 %v675_v28, %v691_v7 }
 0x11d   :  { %v743_v13 = vmax.f32 %v727_v29, 0.0  ;;  %v706_v14 = vmax.f32 %v674_v30, %v690_v10  ;;  %v972_v39 = vpop.f32.mrb[30].mxu0  ;;  %v1020_v40 = vpop.f32.mrb[30].mxu1 }
 0x11e   :  { %760 = vst [vmem:[#allocation2 + $0x58] sm:$0xff] %v744_v11  ;;  %v730_v31 = vadd.f32 %v1403_v45, %v707_v12  ;;  %v677_v32 = vmax.f32 %v1392_v35, %v972_v39  ;;  %v693_v15 = vmax.f32 %v1394_v36, %v1020_v40  ;;  %v493_v16 = vpop.f32.mrb[31].mxu0  ;;  %v653_v41 = vpop.f32.mrb[31].mxu1 }
 0x11f   :  { %759 = vst [vmem:[#allocation2 + $0x50] sm:$0xff] %v743_v13  ;;  %v729_v33 = vadd.f32 %v1403_v45, %v706_v14  ;;  %v676_v34 = vmax.f32 %v1396_v37, %v493_v16  ;;  %v692_v42 = vmax.f32 %v1398_v38, %v653_v41 }
 0x120   :  { %v746_v43 = vmax.f32 %v730_v31, 0.0  ;;  %v709_v17 = vmax.f32 %v677_v32, %v693_v15 }
 0x121   :  { %v745_v18 = vmax.f32 %v729_v33, 0.0  ;;  %v708_v44 = vmax.f32 %v676_v34, %v692_v42 }
 0x122   :  { %762 = vst [vmem:[#allocation2 + $0x68] sm:$0xff] %v746_v43  ;;  %v732_v35 = vadd.f32 %v1403_v45, %v709_v17 }
 0x123   :  { %761 = vst [vmem:[#allocation2 + $0x60] sm:$0xff] %v745_v18  ;;  %v731_v36 = vadd.f32 %v1403_v45, %v708_v44 }
 0x124   :  { %v748_v46 = vmax.f32 %v732_v35, 0.0 }
 0x125   :  { %v747_v47 = vmax.f32 %v731_v36, 0.0 }
 0x126   :  { %764 = vst [vmem:[#allocation2 + $0x78] sm:$0xff] %v748_v46 }
 0x127   :  { %763 = vst [vmem:[#allocation2 + $0x70] sm:$0xff] %v747_v47 }
 0x128   :  { %1049 = shalt.err (!%p1046_p4)
}
 0x129   :  { %s1050_s15 = scalar_lea.hbm %s1458_s3, 2048 }
 0x12a   :  { %p1051_p5 = scmp.ne.s32.totalorder %s1458_s3, %s1050_s15  ;;  %p1054_p6 = scmp.lt.u32.totalorder %s1050_s15, %s1458_s3 }
 0x12c   :  { %p1056_p7 = pnand %p1054_p6, %p1051_p5 }
 0x12e   :  { %1059 = shalt.err (!%p1056_p7)
}
 0x12f   :  { %s1063_s20 = smov 128   ;;  %s1064_s21 = smov 8  }
 0x130   :  { %776 = dma.vmem_to_hbm [thread:$0]  %s771_s11, 2048, %s1458_s3, [#allocation3], %s1063_s20, %s1063_s20, %s1064_s21  }
 0x131   :  { %1060 = dma.done.wait [#allocation3], 2048  }
 0x132   :  { %1061 = vsyncadd [#allocation3], 4294965248 }
 0x133   :  { %780 = vsyncpa [#allocation3], 1 }

</bundles_post_ra>
